<compile_context>
chip_gen: v7x
topology: tpu7x:2x2x1
jax: 0.10.0
libtpu: 0.0.40
codegen_flags: <defaults>
</compile_context>

<pallas_src>
import functools

import jax
import jax.numpy as jnp
from jax.experimental import pallas as pl
from jax.experimental.pallas import tpu as pltpu


def _log_softmax(logits):
    # numerically stable LogSoftmax over the last axis (torch.nn.LogSoftmax(dim=2))
    m = jnp.max(logits, axis=-1, keepdims=True)
    shifted = logits - m
    lse = jnp.log(jnp.sum(jnp.exp(shifted), axis=-1, keepdims=True))
    return shifted - lse


def make_rnn_kernel(seq_len: int, input_size: int, hidden_size: int,
                    output_size: int, output_length: int):
    S, I, H = seq_len, input_size, hidden_size
    del output_size  # implied by W_full's trailing dim

    def kernel(x_ref, h0_ref, w_ref, b_ref, out_ref, hT_ref):
        w_full = w_ref[...]            # (I+H, H+O) fused weight block
        b = b_ref[...]                 # (1, H+O)   fused bias (loaded once)
        wx = w_full[:I, :]             # (I, H+O)   input-side block
        wh = w_full[I:, :]             # (H, H+O)   hidden-side block
        whh = wh[:, :H]                # (H, H)     recurrence matrix, sliced once

        # Hoisted input projection: one dense matmul covers every timestep and both
        # the hidden- and output-side contributions; biases folded in.  Result stays
        # in vregs (no VMEM scratch) and is sliced with static indices below.
        xf = jnp.dot(x_ref[...], wx, preferred_element_type=jnp.float32)  # (S, H+O)
        xf = xf + b

        # Recurrence: h <- XF_hidden[i] + h @ W_hh   (one matmul per step, fully
        # unrolled with static row slices; serial-latency bound, not FLOP bound).
        h = h0_ref[...]                # (1, H)
        for i in range(S - 1):
            h = xf[i:i + 1, :H] + jnp.dot(h, whh,
                                          preferred_element_type=jnp.float32)

        # The reference uses the *last* combined_input = (x[-1], h_prev) for BOTH the
        # final hidden update and the first output -> one fused matmul gives both.
        fused = xf[S - 1:S, :] + jnp.dot(h, wh, preferred_element_type=jnp.float32)
        hidden = fused[:, :H]
        out_prev = _log_softmax(fused[:, H:])
        outputs = [out_prev]

        # Feedback decoding steps (statically unrolled).  The two matmuls of the
        # original module are fused into one via the full fused weight; the lane
        # concat [out_prev | hidden] is a cheap XLU op in a different VLIW slot.
        # Requires output_size == input_size when output_length > 1 (same implicit
        # assumption as the PyTorch module).
        for _ in range(1, output_length):
            combined = jnp.concatenate([out_prev, hidden], axis=-1)    # (1, I+H)
            fused = jnp.dot(combined, w_full,
                            preferred_element_type=jnp.float32) + b    # (1, H+O)
            hidden = fused[:, :H]
            out_prev = _log_softmax(fused[:, H:])
            outputs.append(out_prev)

        # Single store of all output rows; single store of the final hidden state.
        out_ref[...] = jnp.concatenate(outputs, axis=0)
        hT_ref[...] = hidden

    return kernel


def fuse_params(wxh, whh, bh, wxo, who, bo):
    """One-time weight fusion (do NOT call per forward pass)."""
    w_full = jnp.concatenate(
        [jnp.concatenate([wxh, wxo], axis=1),      # (I, H+O)
         jnp.concatenate([whh, who], axis=1)],     # (H, H+O)
        axis=0).astype(jnp.float32)                # (I+H, H+O)
    b = jnp.concatenate([bh, bo], axis=1).astype(jnp.float32)   # (1, H+O)
    return w_full, b


@functools.partial(jax.jit, static_argnames=("output_length",))
def basic_rnn_forward(x, h0, w_full, b, *, output_length=1):
    """Pallas implementation of BasicRNN.forward.

    Args:
      x:      (seq_len, input_size) f32
      h0:     (1, hidden_size) f32
      w_full: (input_size + hidden_size, hidden_size + output_size) fused weights
      b:      (1, hidden_size + output_size) fused bias
    Returns:
      output: (output_length, output_size) log-softmax outputs
      hidden: (1, hidden_size) final hidden state
    """
    seq_len, input_size = x.shape
    hidden_size = h0.shape[-1]
    output_size = w_full.shape[-1] - hidden_size

    kernel = make_rnn_kernel(seq_len, input_size, hidden_size, output_size,
                             output_length)
    vmem = pl.BlockSpec(memory_space=pltpu.MemorySpace.VMEM)

    out, h_t = pl.pallas_call(
        kernel,
        out_shape=(
            jax.ShapeDtypeStruct((output_length, output_size), jnp.float32),
            jax.ShapeDtypeStruct((1, hidden_size), jnp.float32),
        ),
        in_specs=[vmem, vmem, vmem, vmem],
        out_specs=(vmem, vmem),
    )(x.astype(jnp.float32), h0.astype(jnp.float32), w_full, b)
    return out, h_t


def reference_forward(x, h0, wxh, whh, bh, wxo, who, bo, *, output_length=1):
    """Pure-JAX mirror of the PyTorch forward, for verification."""
    seq_len = x.shape[0]
    h = h0
    h_prev = h
    for i in range(seq_len):
        x_t = x[i:i + 1]
        h_prev = h
        h = x_t @ wxh + h @ whh + bh
    x_last = x[seq_len - 1:seq_len]
    outputs = [jax.nn.log_softmax(x_last @ wxo + h_prev @ who + bo, axis=-1)]
    for _ in range(1, output_length):
        comb_x, comb_h = outputs[-1], h
        h = comb_x @ wxh + comb_h @ whh + bh
        outputs.append(jax.nn.log_softmax(comb_x @ wxo + comb_h @ who + bo, axis=-1))
    return jnp.concatenate(outputs, axis=0), h


if __name__ == "__main__":
    input_size = 16
    hidden_size = 32
    output_size = 16   # == input_size so output_length > 1 is well-defined (as in the module)
    seq_len = 8
    output_length = 2

    key = jax.random.PRNGKey(0)
    keys = jax.random.split(key, 8)
    scale = 0.1
    x = jax.random.normal(keys[0], (seq_len, input_size), jnp.float32)
    h0 = jnp.zeros((1, hidden_size), jnp.float32)          # BasicRNN.init_hidden()
    wxh = scale * jax.random.normal(keys[1], (input_size, hidden_size), jnp.float32)
    whh = scale * jax.random.normal(keys[2], (hidden_size, hidden_size), jnp.float32)
    bh = scale * jax.random.normal(keys[3], (1, hidden_size), jnp.float32)
    wxo = scale * jax.random.normal(keys[4], (input_size, output_size), jnp.float32)
    who = scale * jax.random.normal(keys[5], (hidden_size, output_size), jnp.float32)
    bo = scale * jax.random.normal(keys[6], (1, output_size), jnp.float32)

    # Fuse weights once (hoisted out of the per-call path per review).
    w_full, b = fuse_params(wxh, whh, bh, wxo, who, bo)

    out, h_t = basic_rnn_forward(x, h0, w_full, b, output_length=output_length)
    out, h_t = jax.block_until_ready((out, h_t))

    ref_out, ref_h = reference_forward(
        x, h0, wxh, whh, bh, wxo, who, bo, output_length=output_length)

    assert out.shape == (output_length, output_size)
    assert h_t.shape == (1, hidden_size)
    assert jnp.allclose(out, ref_out, atol=1e-5, rtol=1e-5)
    assert jnp.allclose(h_t, ref_h, atol=1e-5, rtol=1e-5)

    print("KERNEL_OK")
</pallas_src>

<mosaic_0001>
module attributes {stable_mosaic.version = 11 : i64} {
  func.func @kernel(%arg0: memref<8x16xf32, #tpu.memory_space<vmem>>, %arg1: memref<1x32xf32, #tpu.memory_space<vmem>>, %arg2: memref<48x48xf32, #tpu.memory_space<vmem>>, %arg3: memref<1x48xf32, #tpu.memory_space<vmem>>, %arg4: memref<2x16xf32, #tpu.memory_space<vmem>>, %arg5: memref<1x32xf32, #tpu.memory_space<vmem>>) attributes {dimension_semantics = [], scalar_prefetch = 0 : i64, scratch_operands = 0 : i64, tpu.core_type = #tpu.core_type<tc>} {
    %c0 = arith.constant 0 : index
    %c0_0 = arith.constant 0 : index
    %0 = vector.load %arg2[%c0, %c0_0] : memref<48x48xf32, #tpu.memory_space<vmem>>, vector<48x48xf32>
    %c0_1 = arith.constant 0 : index
    %c0_2 = arith.constant 0 : index
    %1 = vector.load %arg3[%c0_1, %c0_2] : memref<1x48xf32, #tpu.memory_space<vmem>>, vector<1x48xf32>
    %2 = vector.extract_strided_slice %0 {offsets = [0, 0], sizes = [16, 48], strides = [1, 1]} : vector<48x48xf32> to vector<16x48xf32>
    %3 = vector.extract_strided_slice %0 {offsets = [16, 0], sizes = [32, 48], strides = [1, 1]} : vector<48x48xf32> to vector<32x48xf32>
    %4 = vector.extract_strided_slice %3 {offsets = [0, 0], sizes = [32, 32], strides = [1, 1]} : vector<32x48xf32> to vector<32x32xf32>
    %c0_3 = arith.constant 0 : index
    %c0_4 = arith.constant 0 : index
    %5 = vector.load %arg0[%c0_3, %c0_4] : memref<8x16xf32, #tpu.memory_space<vmem>>, vector<8x16xf32>
    %cst = arith.constant dense<0.000000e+00> : vector<8x48xf32>
    %6 = tpu.matmul %5, %2, %cst {dimension_numbers = #tpu.dot_dimension_numbers<[1], [0], [0], [1], [0, 0, 1, 1], [], []>} : vector<8x16xf32>, vector<16x48xf32>, vector<8x48xf32> -> vector<8x48xf32>
    %7 = vector.broadcast %1 : vector<1x48xf32> to vector<8x48xf32>
    %8 = arith.addf %6, %7 : vector<8x48xf32>
    %c0_5 = arith.constant 0 : index
    %c0_6 = arith.constant 0 : index
    %9 = vector.load %arg1[%c0_5, %c0_6] : memref<1x32xf32, #tpu.memory_space<vmem>>, vector<1x32xf32>
    %10 = vector.extract_strided_slice %8 {offsets = [0, 0], sizes = [1, 32], strides = [1, 1]} : vector<8x48xf32> to vector<1x32xf32>
    %cst_7 = arith.constant dense<0.000000e+00> : vector<1x32xf32>
    %11 = tpu.matmul %9, %4, %cst_7 {dimension_numbers = #tpu.dot_dimension_numbers<[1], [0], [0], [1], [0, 0, 1, 1], [], []>} : vector<1x32xf32>, vector<32x32xf32>, vector<1x32xf32> -> vector<1x32xf32>
    %12 = arith.addf %10, %11 : vector<1x32xf32>
    %13 = vector.extract_strided_slice %8 {offsets = [1, 0], sizes = [1, 32], strides = [1, 1]} : vector<8x48xf32> to vector<1x32xf32>
    %cst_8 = arith.constant dense<0.000000e+00> : vector<1x32xf32>
    %14 = tpu.matmul %12, %4, %cst_8 {dimension_numbers = #tpu.dot_dimension_numbers<[1], [0], [0], [1], [0, 0, 1, 1], [], []>} : vector<1x32xf32>, vector<32x32xf32>, vector<1x32xf32> -> vector<1x32xf32>
    %15 = arith.addf %13, %14 : vector<1x32xf32>
    %16 = vector.extract_strided_slice %8 {offsets = [2, 0], sizes = [1, 32], strides = [1, 1]} : vector<8x48xf32> to vector<1x32xf32>
    %cst_9 = arith.constant dense<0.000000e+00> : vector<1x32xf32>
    %17 = tpu.matmul %15, %4, %cst_9 {dimension_numbers = #tpu.dot_dimension_numbers<[1], [0], [0], [1], [0, 0, 1, 1], [], []>} : vector<1x32xf32>, vector<32x32xf32>, vector<1x32xf32> -> vector<1x32xf32>
    %18 = arith.addf %16, %17 : vector<1x32xf32>
    %19 = vector.extract_strided_slice %8 {offsets = [3, 0], sizes = [1, 32], strides = [1, 1]} : vector<8x48xf32> to vector<1x32xf32>
    %cst_10 = arith.constant dense<0.000000e+00> : vector<1x32xf32>
    %20 = tpu.matmul %18, %4, %cst_10 {dimension_numbers = #tpu.dot_dimension_numbers<[1], [0], [0], [1], [0, 0, 1, 1], [], []>} : vector<1x32xf32>, vector<32x32xf32>, vector<1x32xf32> -> vector<1x32xf32>
    %21 = arith.addf %19, %20 : vector<1x32xf32>
    %22 = vector.extract_strided_slice %8 {offsets = [4, 0], sizes = [1, 32], strides = [1, 1]} : vector<8x48xf32> to vector<1x32xf32>
    %cst_11 = arith.constant dense<0.000000e+00> : vector<1x32xf32>
    %23 = tpu.matmul %21, %4, %cst_11 {dimension_numbers = #tpu.dot_dimension_numbers<[1], [0], [0], [1], [0, 0, 1, 1], [], []>} : vector<1x32xf32>, vector<32x32xf32>, vector<1x32xf32> -> vector<1x32xf32>
    %24 = arith.addf %22, %23 : vector<1x32xf32>
    %25 = vector.extract_strided_slice %8 {offsets = [5, 0], sizes = [1, 32], strides = [1, 1]} : vector<8x48xf32> to vector<1x32xf32>
    %cst_12 = arith.constant dense<0.000000e+00> : vector<1x32xf32>
    %26 = tpu.matmul %24, %4, %cst_12 {dimension_numbers = #tpu.dot_dimension_numbers<[1], [0], [0], [1], [0, 0, 1, 1], [], []>} : vector<1x32xf32>, vector<32x32xf32>, vector<1x32xf32> -> vector<1x32xf32>
    %27 = arith.addf %25, %26 : vector<1x32xf32>
    %28 = vector.extract_strided_slice %8 {offsets = [6, 0], sizes = [1, 32], strides = [1, 1]} : vector<8x48xf32> to vector<1x32xf32>
    %cst_13 = arith.constant dense<0.000000e+00> : vector<1x32xf32>
    %29 = tpu.matmul %27, %4, %cst_13 {dimension_numbers = #tpu.dot_dimension_numbers<[1], [0], [0], [1], [0, 0, 1, 1], [], []>} : vector<1x32xf32>, vector<32x32xf32>, vector<1x32xf32> -> vector<1x32xf32>
    %30 = arith.addf %28, %29 : vector<1x32xf32>
    %31 = vector.extract_strided_slice %8 {offsets = [7, 0], sizes = [1, 48], strides = [1, 1]} : vector<8x48xf32> to vector<1x48xf32>
    %cst_14 = arith.constant dense<0.000000e+00> : vector<1x48xf32>
    %32 = tpu.matmul %30, %3, %cst_14 {dimension_numbers = #tpu.dot_dimension_numbers<[1], [0], [0], [1], [0, 0, 1, 1], [], []>} : vector<1x32xf32>, vector<32x48xf32>, vector<1x48xf32> -> vector<1x48xf32>
    %33 = arith.addf %31, %32 : vector<1x48xf32>
    %34 = vector.extract_strided_slice %33 {offsets = [0, 0], sizes = [1, 32], strides = [1, 1]} : vector<1x48xf32> to vector<1x32xf32>
    %35 = vector.extract_strided_slice %33 {offsets = [0, 32], sizes = [1, 16], strides = [1, 1]} : vector<1x48xf32> to vector<1x16xf32>
    %cst_15 = arith.constant dense<0xFF800000> : vector<1xf32>
    %36 = vector.multi_reduction <maximumf>, %35, %cst_15 [1] : vector<1x16xf32> to vector<1xf32>
    %37 = vector.shape_cast %36 : vector<1xf32> to vector<1x1xf32>
    %38 = vector.broadcast %37 : vector<1x1xf32> to vector<1x16xf32>
    %39 = arith.subf %35, %38 : vector<1x16xf32>
    %40 = math.exp %39 : vector<1x16xf32>
    %cst_16 = arith.constant dense<0.000000e+00> : vector<1xf32>
    %41 = vector.multi_reduction <add>, %40, %cst_16 [1] : vector<1x16xf32> to vector<1xf32>
    %42 = vector.shape_cast %41 : vector<1xf32> to vector<1x1xf32>
    %43 = math.log %42 : vector<1x1xf32>
    %44 = vector.broadcast %43 : vector<1x1xf32> to vector<1x16xf32>
    %45 = arith.subf %39, %44 : vector<1x16xf32>
    %46 = tpu.concatenate %45, %34 in 1 : vector<1x16xf32>, vector<1x32xf32> -> vector<1x48xf32>
    %cst_17 = arith.constant dense<0.000000e+00> : vector<1x48xf32>
    %47 = tpu.matmul %46, %0, %cst_17 {dimension_numbers = #tpu.dot_dimension_numbers<[1], [0], [0], [1], [0, 0, 1, 1], [], []>} : vector<1x48xf32>, vector<48x48xf32>, vector<1x48xf32> -> vector<1x48xf32>
    %48 = arith.addf %47, %1 : vector<1x48xf32>
    %49 = vector.extract_strided_slice %48 {offsets = [0, 0], sizes = [1, 32], strides = [1, 1]} : vector<1x48xf32> to vector<1x32xf32>
    %50 = vector.extract_strided_slice %48 {offsets = [0, 32], sizes = [1, 16], strides = [1, 1]} : vector<1x48xf32> to vector<1x16xf32>
    %cst_18 = arith.constant dense<0xFF800000> : vector<1xf32>
    %51 = vector.multi_reduction <maximumf>, %50, %cst_18 [1] : vector<1x16xf32> to vector<1xf32>
    %52 = vector.shape_cast %51 : vector<1xf32> to vector<1x1xf32>
    %53 = vector.broadcast %52 : vector<1x1xf32> to vector<1x16xf32>
    %54 = arith.subf %50, %53 : vector<1x16xf32>
    %55 = math.exp %54 : vector<1x16xf32>
    %cst_19 = arith.constant dense<0.000000e+00> : vector<1xf32>
    %56 = vector.multi_reduction <add>, %55, %cst_19 [1] : vector<1x16xf32> to vector<1xf32>
    %57 = vector.shape_cast %56 : vector<1xf32> to vector<1x1xf32>
    %58 = math.log %57 : vector<1x1xf32>
    %59 = vector.broadcast %58 : vector<1x1xf32> to vector<1x16xf32>
    %60 = arith.subf %54, %59 : vector<1x16xf32>
    %61 = tpu.concatenate %45, %60 in 0 : vector<1x16xf32>, vector<1x16xf32> -> vector<2x16xf32>
    %c0_20 = arith.constant 0 : index
    %c0_21 = arith.constant 0 : index
    %62 = vector.load %arg4[%c0_20, %c0_21] : memref<2x16xf32, #tpu.memory_space<vmem>>, vector<2x16xf32>
    tpu.vector_store %arg4[%c0_20, %c0_21], %61 {strides = array<i32>} : memref<2x16xf32, #tpu.memory_space<vmem>>, vector<2x16xf32>,
    %c0_22 = arith.constant 0 : index
    %c0_23 = arith.constant 0 : index
    %63 = vector.load %arg5[%c0_22, %c0_23] : memref<1x32xf32, #tpu.memory_space<vmem>>, vector<1x32xf32>
    tpu.vector_store %arg5[%c0_22, %c0_23], %49 {strides = array<i32>} : memref<1x32xf32, #tpu.memory_space<vmem>>, vector<1x32xf32>,
    return
  }
}

</mosaic_0001>

<bundles_post_ra>
// kernel: basic_rnn_forward.1
= control target key start
LH: loop header
LB: loop body
LE: loop exit
PB: predicated region body
PF: predicated region fallthrough
CT: control target
= control target key end

     0   :  { %11 = vsyncpa [#allocation3], 0  ;;  %s1462_s0 = inlined_call_operand.hbm [shape: f32[8,16], index: 0, kind: input, shape index: {}]   ;;  %s1463_s1 = inlined_call_operand.vmem [shape: f32[1,32], index: 1, kind: input, shape index: {}]   ;;  %s1464_s2 = inlined_call_operand.hbm [shape: f32[48,48], index: 2, kind: input, shape index: {}]   ;;  %s1465_s3 = inlined_call_operand.vmem [shape: f32[1,48], index: 3, kind: input, shape index: {}]   ;;  %s1466_s4 = inlined_call_operand.hbm [shape: f32[2,16], index: 4, kind: output, shape index: {0}]   ;;  %s1467_s5 = inlined_call_operand.hbm [shape: f32[1,32], index: 5, kind: output, shape index: {1}]  }
   0x1   :  { %12 = vsyncpa [#allocation6], 0 }
   0x2   :  { %13 = vsyncpa [#allocation4], 0 }
   0x3   :  { %14 = vsyncpa [#allocation9], 0  ;;  %s1266_s18 = smov [#allocation2]   ;;  %s1267_s20 = smov [#allocation5]  }
   0x4   :  { %s21_s19 = sshll.u32 %s1266_s18, 4  ;;  %s32_s21 = sshll.u32 %s1267_s20, 4  ;;  %s22_s19 = int_to_ptr.vmem [resolvable:$true] %s21_s19  ;;  %s1307_s21 = int_to_ptr.vmem [resolvable:$true] %s32_s21 }
   0x5   :  { %s1170_s24 = scalar_lea.hbm %s1462_s0, 128 }
   0x6   :  { %p1171_p0 = scmp.ne.s32.totalorder %s1462_s0, %s1170_s24  ;;  %p1174_p1 = scmp.lt.u32.totalorder %s1170_s24, %s1462_s0 }
   0x8   :  { %p1176_p2 = pnand %p1174_p1, %p1171_p0 }
   0xa   :  { %1179 = shalt.err (!%p1176_p2)
}
   0xb   :  { %s1180_s29 = scalar_lea.vmem %s22_s19, 128  ;;  %p1185_p4 = scmp.lt.s32.totalorder %s22_s19, %s22_s19 }
   0xc   :  { %p1181_p3 = scmp.ne.s32.totalorder %s22_s19, %s1180_s29  ;;  %p1186_p5 = scmp.lt.s32.totalorder %s1180_s29, %s1180_s29 }
   0xe   :  { %p1187_p6 = por %p1186_p5, %p1185_p4 }
  0x10   :  { %p1188_p7 = pnand %p1187_p6, %p1181_p3 }
  0x12   :  { %1191 = shalt.err (!%p1188_p7)
}
  0x13   :  { %24 = dma.hbm_to_vmem [thread:$0]  %s1462_s0, 128, %s22_s19, [#allocation3]  }
  0x14   :  { %s1192_s9 = scalar_lea.hbm %s1464_s2, 768 }
  0x15   :  { %p1193_p8 = scmp.ne.s32.totalorder %s1464_s2, %s1192_s9  ;;  %p1196_p9 = scmp.lt.u32.totalorder %s1192_s9, %s1464_s2 }
  0x17   :  { %p1198_p10 = pnand %p1196_p9, %p1193_p8 }
  0x19   :  { %1201 = shalt.err (!%p1198_p10)
}
  0x1a   :  { %s1202_s14 = scalar_lea.vmem %s1307_s21, 768  ;;  %p1207_p12 = scmp.lt.s32.totalorder %s1307_s21, %s1307_s21 }
  0x1b   :  { %p1203_p11 = scmp.ne.s32.totalorder %s1307_s21, %s1202_s14  ;;  %p1208_p13 = scmp.lt.s32.totalorder %s1202_s14, %s1202_s14 }
  0x1d   :  { %p1209_p0 = por %p1208_p13, %p1207_p12 }
  0x1f   :  { %p1210_p1 = pnand %p1209_p0, %p1203_p11 }
  0x21   :  { %1213 = shalt.err (!%p1210_p1)
}
  0x22   :  { %s1268_s0 = smov 128   ;;  %s1269_s15 = smov 8  }
  0x23   :  { %38 = dma.hbm_to_vmem [thread:$0]  %s1464_s2, 768, %s1307_s21, [#allocation6], %s1268_s0, %s1268_s0, %s1269_s15  }
  0x24   :  { %1258 = dma.done.wait [#allocation3], 128  }
  0x25   :  { %1259 = vsyncadd [#allocation3], 4294967168 }
  0x26   :  { %1260 = dma.done.wait [#allocation6], 768  }
  0x27   :  { %1261 = vsyncadd [#allocation6], 4294966528  ;;  %v1270_v0 = vmov 0.0|0.0   ;;  %vm1271_vm0 = vmmov 0   ;;  %v1272_v1 = vmov 0.0   ;;  %v49_v2 = vld [vmem:[#allocation5 + $0x10] sm:$0xff]  ;;  %v56_v13 = vlaneseq }
  0x28   :  { %1094 = vmatprep.subr.bf16.mxu1 %v1270_v0  ;;  %1091 = vmatprep.subr.bf16.mxu0 %v1270_v0  ;;  %v50_v3 = vld [vmem:[#allocation5 + $0x18] sm:$0xff]  ;;  %v47_v4 = vld [vmem:[#allocation5] sm:$0xff]  ;;  %v48_v6 = vld [vmem:[#allocation5 + $0x8] sm:$0xff]  ;;  %vm61_vm1 = vcmask 130048   ;;  %vm136_vm2 = vcmask 261120   ;;  %vm756_vm3 = vcmask 392455  }
  0x29   :  { %985 = vmatprep.mubr.msk.f32.mxu0 %vm1271_vm0, %v1272_v1  ;;  %996 = vmatprep.mubr.msk.f32.mxu1 %vm1271_vm0, %v1272_v1  ;;  %v1344_v5 = vpack.c.bf16 %v50_v3, %v49_v2  ;;  %v51_v7 = vld [vmem:[#allocation5 + $0x20] sm:$0xff]  ;;  %v1346_v8 = vpack.c.bf16 %v48_v6, %v47_v4  ;;  %v52_v9 = vld [vmem:[#allocation5 + $0x28] sm:$0xff]  ;;  %v54_v11 = vld [vmem:[#allocation2] sm:$0xff]  ;;  %v57_v14 = vshrl.u32 %v56_v13, 7  ;;  %vm767_vm4 = vcmask 130055   ;;  %s1274_s20 = smov 16  }
  0x2a   :  { %v1349_v10 = vpack.c.bf16 %v52_v9, %v51_v7  ;;  %v135_v12 = vld [vmem:[%s1463_s1] sm:$0x1]  ;;  %vm785_vm5 = vcmask 392192   ;;  %vm858_vm6 = vcmask 385280   ;;  %vm889_vm7 = vcmask 253952   ;;  %s1275_s21 = smov [#allocation8]  }
  0x2b   :  { %1096 = vmatpush3.bf16.msra.mxu1 %v1344_v5  ;;  %1093 = vmatpush3.bf16.msra.mxu0 %v1346_v8  ;;  %v58_v15 = vsub.s32 0, %v57_v14  ;;  %v1376_v16 = vld [vmem:[%s1465_s3] sm:$0x1]  ;;  %s1273_s3 = smov 96   ;;  %vm869_vm8 = vcmask 122880   ;;  %s907_s22 = sshll.u32 %s1275_s21, 4  ;;  %s908_s22 = int_to_ptr.vmem [resolvable:$true] %s907_s22 }
  0x2c   :  { %1097 = vmatprep.subr.bf16.mxu1 %v1270_v0  ;;  %1100 = vmatprep.subr.bf16.mxu0 %v1270_v0  ;;  %s1214_s23 = scalar_lea.vmem %s908_s22, 16  ;;  %s1218_s24 = scalar_lea.vmem %s908_s22, 32 }
  0x2d   :  { %v59_v17 = vrot.slane %v1376_v16, %v58_v15  ;;  %p1215_p2 = scmp.ne.s32.totalorder %s908_s22, %s1214_s23  ;;  %p1219_p3 = scmp.lt.s32.totalorder %s908_s22, %s908_s22 }
  0x2e   :  { %986 = vmatmul.mubr.msk.f32.vlgmr.msra.gmra.mrb[0].mxu0 %vm61_vm1, %v54_v11  ;;  %p1220_p4 = scmp.lt.s32.totalorder %s1218_s24, %s1214_s23 }
  0x2f   :  { %1099 = vmatpush3.bf16.msra.mxu1 %v1349_v10  ;;  %1102 = vmatpush3.bf16.msra.mxu0 %v1344_v5 }
  0x30   :  { %1007 = vmatprep.mubr.msk.f32.mxu0 %vm1271_vm0, %v1272_v1  ;;  %1103 = vmatprep.subr.bf16.mxu0 %v1270_v0  ;;  %p1221_p5 = por %p1220_p4, %p1219_p3 }
  0x31   :  { %1106 = vmatprep.subr.bf16.mxu1 %v1270_v0 }
  0x32   :  { %997 = vmatmul.mubr.msk.f32.vlgmr.msra.gmra.mrb[0].mxu1 %vm136_vm2, %v135_v12  ;;  %p1222_p6 = pnand %p1221_p5, %p1215_p2 }
  0x33   :  { %1108 = vmatpush3.bf16.msra.mxu1 %v1344_v5  ;;  %1018 = vmatprep.mubr.msk.f32.mxu1 %vm1271_vm0, %v1272_v1 }
  0x34   :  { %1105 = vmatpush3.bf16.msra.mxu0 %v1349_v10  ;;  %1109 = vmatprep.subr.bf16.mxu1 %v1270_v0 }
  0x35   :  { %1112 = vmatprep.subr.bf16.mxu0 %v1270_v0 }
  0x37   :  { %1111 = vmatpush3.bf16.msra.mxu1 %v1349_v10 }
  0x38   :  { %1118 = vmatprep.subr.bf16.mxu1 %v1270_v0 }
 0x101   :  { %v131_v18 = vpop.f32.mrb[0].mxu0 }
 0x102   :  { %v1379_v19 = vadd.f32 %v131_v18, %v59_v17  ;;  %v987_v20 = vpop.f32.mrb[1].mxu0 }
 0x105   :  { %v206_v21 = vpop.f32.mrb[0].mxu1 }
 0x106   :  { %v210_v22 = vadd.f32 %v206_v21, %v1379_v19  ;;  %v998_v23 = vpop.f32.mrb[1].mxu1 }
 0x108   :  { %1008 = vmatmul.mubr.msk.f32.vlgmr.msra.gmra.mrb[2].mxu0 %vm136_vm2, %v210_v22 }
 0x109   :  { %1114 = vmatpush3.bf16.msra.mxu0 %v1344_v5  ;;  %1029 = vmatprep.mubr.msk.f32.mxu0 %vm1271_vm0, %v1272_v1 }
 0x10a   :  { %1115 = vmatprep.subr.bf16.mxu0 %v1270_v0 }
 0x10d   :  { %1117 = vmatpush3.bf16.msra.mxu0 %v1349_v10 }
 0x10e   :  { %1124 = vmatprep.subr.bf16.mxu0 %v1270_v0 }
 0x1db   :  { %v280_v24 = vpop.f32.mrb[2].mxu0 }
 0x1dc   :  { %v285_v25 = vrot.slane %v280_v24, 7  ;;  %v1009_v26 = vpop.f32.mrb[3].mxu0 }
 0x1de   :  { %v287_v27 = vadd.f32 %v285_v25, %v1379_v19 }
 0x1e0   :  { %v289_v28 = vrot.slane %v287_v27, 1 }
 0x1e2   :  { %1019 = vmatmul.mubr.msk.f32.vlgmr.msra.gmra.mrb[2].mxu1 %vm136_vm2, %v289_v28 }
 0x1e3   :  { %1120 = vmatpush3.bf16.msra.mxu1 %v1344_v5  ;;  %1040 = vmatprep.mubr.msk.f32.mxu1 %vm1271_vm0, %v1272_v1 }
 0x1e4   :  { %1121 = vmatprep.subr.bf16.mxu1 %v1270_v0 }
 0x1e7   :  { %1123 = vmatpush3.bf16.msra.mxu1 %v1349_v10 }
 0x1e8   :  { %1130 = vmatprep.subr.bf16.mxu1 %v1270_v0 }
 0x2b5   :  { %v358_v29 = vpop.f32.mrb[2].mxu1 }
 0x2b6   :  { %v363_v30 = vrot.slane %v358_v29, 6  ;;  %v1020_v31 = vpop.f32.mrb[3].mxu1 }
 0x2b8   :  { %v365_v32 = vadd.f32 %v363_v30, %v1379_v19 }
 0x2ba   :  { %v367_v33 = vrot.slane %v365_v32, 2 }
 0x2bc   :  { %1030 = vmatmul.mubr.msk.f32.vlgmr.msra.gmra.mrb[4].mxu0 %vm136_vm2, %v367_v33 }
 0x2bd   :  { %1126 = vmatpush3.bf16.msra.mxu0 %v1344_v5  ;;  %1051 = vmatprep.mubr.msk.f32.mxu0 %vm1271_vm0, %v1272_v1 }
 0x2be   :  { %1127 = vmatprep.subr.bf16.mxu0 %v1270_v0 }
 0x2c1   :  { %1129 = vmatpush3.bf16.msra.mxu0 %v1349_v10 }
 0x2c2   :  { %1136 = vmatprep.subr.bf16.mxu0 %v1270_v0 }
 0x38f   :  { %v436_v34 = vpop.f32.mrb[4].mxu0 }
 0x390   :  { %v441_v35 = vrot.slane %v436_v34, 5  ;;  %v1031_v36 = vpop.f32.mrb[5].mxu0 }
 0x392   :  { %v443_v37 = vadd.f32 %v441_v35, %v1379_v19 }
 0x394   :  { %v445_v38 = vrot.slane %v443_v37, 3 }
 0x396   :  { %1041 = vmatmul.mubr.msk.f32.vlgmr.msra.gmra.mrb[4].mxu1 %vm136_vm2, %v445_v38 }
 0x397   :  { %1132 = vmatpush3.bf16.msra.mxu1 %v1344_v5  ;;  %1062 = vmatprep.mubr.msk.f32.mxu1 %vm1271_vm0, %v1272_v1 }
 0x398   :  { %1133 = vmatprep.subr.bf16.mxu1 %v1270_v0 }
 0x39b   :  { %1135 = vmatpush3.bf16.msra.mxu1 %v1349_v10 }
 0x39c   :  { %1142 = vmatprep.subr.bf16.mxu1 %v1270_v0 }
 0x469   :  { %v514_v39 = vpop.f32.mrb[4].mxu1 }
 0x46a   :  { %v519_v40 = vrot.slane %v514_v39, 4  ;;  %v1042_v41 = vpop.f32.mrb[5].mxu1 }
 0x46c   :  { %v521_v42 = vadd.f32 %v519_v40, %v1379_v19 }
 0x46e   :  { %v523_v43 = vrot.slane %v521_v42, 4 }
 0x470   :  { %1052 = vmatmul.mubr.msk.f32.vlgmr.msra.gmra.mrb[6].mxu0 %vm136_vm2, %v523_v43 }
 0x471   :  { %1138 = vmatpush3.bf16.msra.mxu0 %v1344_v5  ;;  %1073 = vmatprep.mubr.msk.f32.mxu0 %vm1271_vm0, %v1272_v1 }
 0x472   :  { %1139 = vmatprep.subr.bf16.mxu0 %v1270_v0 }
 0x475   :  { %1141 = vmatpush3.bf16.msra.mxu0 %v1349_v10 }
 0x543   :  { %v592_v44 = vpop.f32.mrb[6].mxu0 }
 0x544   :  { %v597_v45 = vrot.slane %v592_v44, 3  ;;  %v1053_v46 = vpop.f32.mrb[7].mxu0 }
 0x546   :  { %v599_v47 = vadd.f32 %v597_v45, %v1379_v19 }
 0x548   :  { %v601_v48 = vrot.slane %v599_v47, 5 }
 0x54a   :  { %1063 = vmatmul.mubr.msk.f32.vlgmr.msra.gmra.mrb[6].mxu1 %vm136_vm2, %v601_v48 }
 0x54b   :  { %1144 = vmatpush3.bf16.msra.mxu1 %v1346_v8  ;;  %1088 = vmatprep.mubr.msk.f32.mxu1 %vm1271_vm0, %v1272_v1 }
 0x54c   :  { %1145 = vmatprep.subr.bf16.mxu1 %v1270_v0 }
 0x54f   :  { %1147 = vmatpush3.bf16.msra.mxu1 %v1344_v5 }
 0x550   :  { %1148 = vmatprep.subr.bf16.mxu1 %v1270_v0 }
 0x553   :  { %1150 = vmatpush3.bf16.msra.mxu1 %v1349_v10 }
 0x61d   :  { %v670_v49 = vpop.f32.mrb[6].mxu1 }
 0x61e   :  { %v675_v50 = vrot.slane %v670_v49, 2  ;;  %v1064_v51 = vpop.f32.mrb[7].mxu1 }
 0x620   :  { %v677_v52 = vadd.f32 %v675_v50, %v1379_v19 }
 0x622   :  { %v679_v53 = vrot.slane %v677_v52, 6 }
 0x624   :  { %1074 = vmatmul.mubr.msk.f32.vlgmr.msra.gmra.mrb[8].mxu0 %vm136_vm2, %v679_v53 }
 0x6f7   :  { %v748_v54 = vpop.f32.mrb[8].mxu0 }
 0x6f8   :  { %v753_v55 = vrot.slane %v748_v54, 1  ;;  %v1075_v56 = vpop.f32.mrb[9].mxu0 }
 0x6fa   :  { %v755_v57 = vadd.f32 %v753_v55, %v1379_v19 }
 0x6fc   :  { %v757_v58 = vsel %vm756_vm3, %v755_v57, -inf }
 0x6fd   :  { %758 = vmax.xlane.f32.xlu0 %v757_v58 }
 0x78a   :  { %v759_v59 = vpop.xlane.xlu0 %758 }
 0x78b   :  { %v760_v60 = vsub.f32 %v755_v57, %v759_v59 }
 0x78d   :  { %v761_v61 = vmul.f32 1.442695, %v760_v60 }
 0x78f   :  { %1162 = vpow2.f32 %v761_v61 }
 0x799   :  { %v1163_v62 = vpop.eup %1162 }
 0x79a   :  { %764 = vrot.lane.b32.xlu0 %v1163_v62, %s1273_s3 }
 0x80c   :  { %v765_v63 = vpop.permute.xlu0 %764 }
 0x80d   :  { %v768_v0 = vsel %vm767_vm4, %v765_v63, 0.0 }
 0x80e   :  { %769 = vadd.xlane.f32.xlu1 %v768_v0 }
 0x89b   :  { %v770_v1 = vpop.xlane.xlu1 %769 }
 0x89c   :  { %1164 = vlog2.f32 %v770_v1 }
 0x8a6   :  { %v1165_v2 = vpop.eup %1164 }
 0x8a7   :  { %v772_v3 = vmul.f32 0.6931472, %v1165_v2 }
 0x8a9   :  { %v773_v4 = vsub.f32 %v760_v60, %v772_v3 }
 0x8ab   :  { %775 = vrot.lane.b32.xlu1 %v773_v4, %s1273_s3 }
 0x8af   :  { %779 = vrot.lane.b32.xlu1 %v755_v57, %s1274_s20 }
 0x91d   :  { %v776_v5 = vpop.permute.xlu1 %775 }
 0x921   :  { %v780_v6 = vpop.permute.xlu1 %779 }
 0x922   :  { %v782_v7 = vsel %vm61_vm1, %v776_v5, %v780_v6 }
 0x923   :  { %v784_v8 = vrot.slane %v782_v7, 7 }
 0x925   :  { %1089 = vmatmul.mubr.msk.f32.vlgmr.msra.gmra.mrb[8].mxu1 %vm785_vm5, %v784_v8 }
 0x9f8   :  { %v854_v9 = vpop.f32.mrb[8].mxu1 }
 0x9f9   :  { %v855_v10 = vadd.f32 %v854_v9, %v1376_v16  ;;  %v1090_v11 = vpop.f32.mrb[9].mxu1 }
 0x9fb   :  { %v859_v12 = vsel %vm858_vm6, %v855_v10, -inf  ;;  %890 = vst.msk [vmem:[#allocation8] sm:$0x1] %vm889_vm7, %v855_v10 }
 0x9fc   :  { %860 = vmax.xlane.f32.xlu1 %v859_v12 }
 0xa89   :  { %v861_v13 = vpop.xlane.xlu1 %860 }
 0xa8a   :  { %v862_v14 = vsub.f32 %v855_v10, %v861_v13 }
 0xa8c   :  { %v863_v15 = vmul.f32 1.442695, %v862_v14 }
 0xa8e   :  { %1166 = vpow2.f32 %v863_v15 }
 0xa98   :  { %v1167_v17 = vpop.eup %1166 }
 0xa99   :  { %866 = vrot.lane.b32.xlu0 %v1167_v17, %s1273_s3 }
 0xb0b   :  { %v867_v18 = vpop.permute.xlu0 %866 }
 0xb0c   :  { %v870_v19 = vsel %vm869_vm8, %v867_v18, 0.0 }
 0xb0d   :  { %871 = vadd.xlane.f32.xlu0 %v870_v19 }
 0xb9a   :  { %v872_v20 = vpop.xlane.xlu0 %871 }
 0xb9b   :  { %1168 = vlog2.f32 %v872_v20 }
 0xb9c   :  { %1225 = shalt.err (!%p1222_p6)
}
 0xb9d   :  { %s1226_s27 = scalar_lea.hbm %s1467_s5, 16 }
 0xb9e   :  { %p1227_p7 = scmp.ne.s32.totalorder %s1467_s5, %s1226_s27  ;;  %p1230_p8 = scmp.lt.u32.totalorder %s1226_s27, %s1467_s5 }
 0xba0   :  { %p1232_p9 = pnand %p1230_p8, %p1227_p7 }
 0xba2   :  { %1235 = shalt.err (!%p1232_p9)
}
 0xba3   :  { %910 = dma.vmem_to_hbm [thread:$0]  %s908_s22, 16, %s1467_s5, [#allocation9]   ;;  %vm881_vm9 = vcmask 1040384   ;;  %v876_v23 = vrot.slane %v773_v4, 7  ;;  %vm887_vm10 = vcmask 123904  }
 0xba4   :  { %s1276_s9 = smov [#allocation7]  }
 0xba5   :  { %v1169_v16 = vpop.eup %1168  ;;  %s897_s10 = sshll.u32 %s1276_s9, 4  ;;  %s898_s10 = int_to_ptr.vmem [resolvable:$true] %s897_s10 }
 0xba6   :  { %v874_v21 = vmul.f32 0.6931472, %v1169_v16  ;;  %s1236_s11 = scalar_lea.vmem %s898_s10, 32  ;;  %p1241_p11 = scmp.lt.s32.totalorder %s898_s10, %s898_s10 }
 0xba7   :  { %p1237_p10 = scmp.ne.s32.totalorder %s898_s10, %s1236_s11  ;;  %p1242_p12 = scmp.lt.s32.totalorder %s1236_s11, %s1236_s11 }
 0xba8   :  { %v875_v22 = vsub.f32 %v862_v14, %v874_v21 }
 0xba9   :  { %p1243_p13 = por %p1242_p12, %p1241_p11 }
 0xbaa   :  { %v879_v24 = vrot.slane %v875_v22, 7 }
 0xbab   :  { %p1244_p0 = pnand %p1243_p13, %p1237_p10 }
 0xbac   :  { %v882_v25 = vsel %vm881_vm9, %v876_v23, %v879_v24 }
 0xbad   :  { %884 = vrot.lane.b32.xlu0 %v882_v25, %s1273_s3 }
 0xc1f   :  { %v885_v26 = vpop.permute.xlu0 %884 }
 0xc20   :  { %888 = vst.msk [vmem:[#allocation7] sm:$0x3] %vm887_vm10, %v885_v26 }
 0xc21   :  { %1247 = shalt.err (!%p1244_p0)
}
 0xc22   :  { %s1248_s13 = scalar_lea.hbm %s1466_s4, 32 }
 0xc23   :  { %p1249_p1 = scmp.ne.s32.totalorder %s1466_s4, %s1248_s13  ;;  %p1252_p2 = scmp.lt.u32.totalorder %s1248_s13, %s1466_s4 }
 0xc25   :  { %p1254_p3 = pnand %p1252_p2, %p1249_p1 }
 0xc27   :  { %1257 = shalt.err (!%p1254_p3)
}
 0xc28   :  { %900 = dma.vmem_to_hbm [thread:$0]  %s898_s10, 32, %s1466_s4, [#allocation4]  }
 0xc29   :  { %1262 = dma.done.wait [#allocation4], 32  }
 0xc2a   :  { %1263 = vsyncadd [#allocation4], 4294967264 }
 0xc2b   :  { %1264 = dma.done.wait [#allocation9], 16  }
 0xc2c   :  { %1265 = vsyncadd [#allocation9], 4294967280 }
 0xc2d   :  { %917 = vsyncpa [#allocation3], 1 }
 0xc2e   :  { %918 = vsyncpa [#allocation6], 1 }
 0xc2f   :  { %919 = vsyncpa [#allocation4], 1 }
 0xc30   :  { %920 = vsyncpa [#allocation9], 1 }

</bundles_post_ra>
